<compile_context>
chip_gen: v6e
topology: v6e:2x2x1
jax: 0.10.0
libtpu: 0.0.40
codegen_flags: <defaults>
</compile_context>

<pallas_src>
import functools

import jax
import jax.numpy as jnp
from jax.experimental import pallas as pl
from jax.experimental.pallas import tpu as pltpu


def _combined_loss_kernel(x_ref, tb_ref, tgt_ref, w_ref, out_ref, acc_ref, *,
                          binary_tb):
    # x_ref  : (1, C, TS)  float  log-prob chunk
    # tb_ref : (1, C, TS)  float  dice-target chunk (bf16 recommended for 0/1 masks)
    # tgt_ref: (1, 1, TS)  float  class-index chunk (bf16: exact for ids < 256)
    # w_ref  : (1, 1, TS)  float  per-pixel weight chunk
    # out_ref: (1, 1, 128) f32    lanes [0..3] = [inter, union, picked_sum, weight_sum]
    # acc_ref: SMEM (4,)   f32    running partials for the current (sample, group)
    s = pl.program_id(2)
    last = pl.num_programs(2) - 1

    @pl.when(s == 0)
    def _init():
        acc_ref[0] = 0.0
        acc_ref[1] = 0.0
        acc_ref[2] = 0.0
        acc_ref[3] = 0.0

    x = x_ref[0].astype(jnp.float32)      # (C, TS)   upcast after load; accumulate in f32
    tb = tb_ref[0].astype(jnp.float32)    # (C, TS)
    tgt = tgt_ref[0].astype(jnp.float32)  # (1, TS)
    w = w_ref[0].astype(jnp.float32)      # (1, TS)

    # (C,1) channel iota broadcast against the (1,TS) target row (no full (C,TS) iota).
    ch = jax.lax.broadcasted_iota(jnp.int32, (x.shape[0], 1), 0).astype(jnp.float32)
    picked = jnp.where(ch == tgt, x, 0.0)                 # (C, TS) gathered log-probs

    # Dice union term: tb*tb == tb when the mask is guaranteed 0/1.
    union_elems = x * x + (tb if binary_tb else tb * tb)

    # TODO(synk): on v7x (VALU-bound) defer these cross-lane reduces (per-lane VMEM
    # accumulator or MXU ones-vector dot); with the large tiles chosen below the per-step
    # reduce tail is ~1% of the bulk work on the mem-bound v5e/v6e path.
    acc_ref[0] += jnp.sum(x * tb)          # dice intersection
    acc_ref[1] += jnp.sum(union_elems)     # dice union
    acc_ref[2] += jnp.sum(picked)          # gathered log-prob sum (NLL numerator)
    acc_ref[3] += jnp.sum(w)               # weight sum

    @pl.when(s == last)
    def _finalize():
        lane = jax.lax.broadcasted_iota(jnp.int32, (1, 1, 128), 2)
        out_ref[...] = jnp.where(
            lane == 0, acc_ref[0],
            jnp.where(lane == 1, acc_ref[1],
                      jnp.where(lane == 2, acc_ref[2],
                                jnp.where(lane == 3, acc_ref[3], 0.0))))


def _round_up(v, m):
    return (v + m - 1) // m * m


def _vmem_budgets():
    """(total_double_buffered_tile_budget_bytes, vmem_limit_bytes) per TPU generation."""
    try:
        kind = jax.devices()[0].device_kind.lower()
    except Exception:
        kind = ""
    if "v2" in kind or "v3" in kind:
        return 4 << 20, 14 << 20            # tiny on-chip VMEM; stay very small
    if "v5 lite" in kind or "v5lite" in kind or "v5e" in kind:
        return 12 << 20, 48 << 20           # v5e: 128 MiB physical; mem-bound, modest tiles
    if "v6" in kind or "trillium" in kind:
        return 32 << 20, 96 << 20           # v6e: 128 MiB physical VMEM -> go big
    return 16 << 20, 48 << 20               # v7x (64 MiB/TC) and unknown: conservative cap


def _per_lane_vmem_bytes(C, x_itemsize, tb_itemsize):
    """Double-buffered VMEM bytes per lane (per element of TS) across all four input streams.

    Includes sublane padding: (1,C,TS) blocks pad C up to 8 sublanes; (1,1,TS) rows occupy a
    full (sublane_tile x 128) tile per 128 lanes (~32 B/lane regardless of dtype).
    """
    c8 = _round_up(C, 8)
    return 2 * (c8 * x_itemsize + c8 * tb_itemsize + 32 + 32)


def _choose_tiling(S, C, x_itemsize, tb_itemsize, groups):
    """Pick (tile_S, n_chunks, groups, S_padded, vmem_limit) for the given problem."""
    s128 = _round_up(S, 128)
    tile_budget, vmem_limit = _vmem_budgets()
    per_lane = _per_lane_vmem_bytes(C, x_itemsize, tb_itemsize)
    ts_cap = max(128, (tile_budget // per_lane) // 128 * 128)

    if s128 <= ts_cap:
        ts = s128
    else:
        ts = 128
        t = ts_cap
        while t >= 128:                     # prefer a divisor of s128 -> no extra padding
            if s128 % t == 0:
                ts = t
                break
            t -= 128

    n_chunks = -(-s128 // ts)               # cdiv
    if groups > 1:
        if n_chunks < groups:
            groups = 1
        elif n_chunks % groups:
            n_chunks = _round_up(n_chunks, groups)
    s_pad = n_chunks * ts
    return ts, n_chunks, groups, s_pad, vmem_limit


@functools.partial(jax.jit, static_argnames=("target_bin_is_binary",))
def combined_loss(x, target, target_bin, weight, *, target_bin_is_binary=False):
    """CombinedLoss forward.

    x          : (N, C, H, W) log-probabilities (keep f32: the dice union accumulates
                 sum(x*x); bf16 x is possible but validate tolerance at your image sizes).
    target     : (N, H, W) integer class indices in [0, C).
    target_bin : (N, C, H, W) dice target (bf16 is exact for 0/1 masks, halves its HBM traffic).
    weight     : (N, H, W) per-pixel weight (bf16 fine; upcast to f32 in-kernel).
    target_bin_is_binary : set True when target_bin is guaranteed 0/1; replaces tb*tb with tb
                 (bit-identical in that case, one fewer vmul per streamed element).
    """
    N, C, H, W = x.shape
    S = H * W

    # Megacore coverage: with N==1 (or odd N) split the spatial chunks into 2 parallel groups
    # so both TensorCores stay busy; partial sums are combined exactly in the epilogue.
    want_groups = 1 if N % 2 == 0 else 2

    ts, n_chunks, G, s_pad, vmem_limit = _choose_tiling(
        S, C, x.dtype.itemsize, target_bin.dtype.itemsize, want_groups)
    cpg = n_chunks // G

    # Lane-dense layout: collapse H, W into S (free reshape of contiguous trailing dims).
    x2 = x.reshape(N, C, S)
    tb2 = target_bin.reshape(N, C, S)
    # Target shipped as bf16: exact for class ids < 256, 2 B/px instead of 4 (int8 would be
    # 1 B/px; the float compare keeps the proven bf16->f32 upcast path).  f32 fallback is
    # exact for any realistic number of classes.
    tgt_dtype = jnp.bfloat16 if C <= 256 else jnp.float32
    tgt2 = target.reshape(N, 1, S).astype(tgt_dtype)
    w2 = weight.reshape(N, 1, S)

    if s_pad > S:
        pad = ((0, 0), (0, 0), (0, s_pad - S))
        x2 = jnp.pad(x2, pad)          # zeros are neutral for every accumulated sum
        tb2 = jnp.pad(tb2, pad)
        tgt2 = jnp.pad(tgt2, pad)      # padded pixels select class 0 of a zero x -> 0
        w2 = jnp.pad(w2, pad)

    kernel = functools.partial(_combined_loss_kernel,
                               binary_tb=bool(target_bin_is_binary))

    partials = pl.pallas_call(
        kernel,
        out_shape=jax.ShapeDtypeStruct((N * G, 1, 128), jnp.float32),
        grid_spec=pltpu.PrefetchScalarGridSpec(
            num_scalar_prefetch=0,
            grid=(N, G, cpg),                       # reduction (spatial) axis last
            in_specs=[
                pl.BlockSpec((1, C, ts), lambda n, g, s: (n, 0, g * cpg + s)),
                pl.BlockSpec((1, C, ts), lambda n, g, s: (n, 0, g * cpg + s)),
                pl.BlockSpec((1, 1, ts), lambda n, g, s: (n, 0, g * cpg + s)),
                pl.BlockSpec((1, 1, ts), lambda n, g, s: (n, 0, g * cpg + s)),
            ],
            out_specs=pl.BlockSpec((1, 1, 128), lambda n, g, s: (n * G + g, 0, 0)),
            scratch_shapes=[pltpu.SMEM((4,), jnp.float32)],
        ),
        compiler_params=pltpu.CompilerParams(
            dimension_semantics=("parallel", "parallel", "arbitrary"),
            vmem_limit_bytes=int(vmem_limit)),
    )(x2, tb2, tgt2, w2)

    p = partials.reshape(N, G, 128)
    inter = jnp.sum(p[:, :, 0], axis=1)    # per-sample dice intersection
    union = jnp.sum(p[:, :, 1], axis=1)    # per-sample dice union
    picked = jnp.sum(p[:, :, 2], axis=1)   # per-sample gathered log-prob sum
    wsum = jnp.sum(p[:, :, 3], axis=1)     # per-sample weight sum

    dice = 2.0 * (inter + 1e-4) / (union + 1e-4)
    y1 = 1.0 - jnp.sum(dice) / N                 # DiceLoss
    nll = -jnp.sum(picked) / (N * H * W)         # NLLLoss2d (size_average=True)
    y2 = nll * (jnp.sum(wsum) / (N * H * W))     # mean(nll_scalar * weight)
    return y1 + y2


def _reference(x, target, target_bin, weight):
    """Pure-JAX reference matching the PyTorch module."""
    xf = x.astype(jnp.float32)
    tb = target_bin.astype(jnp.float32)
    wf = weight.astype(jnp.float32)
    inter = jnp.sum(xf * tb, axis=(1, 2, 3)) + 1e-4
    union = jnp.sum(xf * xf, axis=(1, 2, 3)) + jnp.sum(tb * tb, axis=(1, 2, 3)) + 1e-4
    y1 = 1.0 - jnp.mean(2.0 * inter / union)
    picked = jnp.take_along_axis(xf, target[:, None].astype(jnp.int32), axis=1)[:, 0]
    nll = -jnp.mean(picked)
    y2 = nll * jnp.mean(wf)
    return y1 + y2


if __name__ == "__main__":
    N, C, H, W = 2, 4, 16, 16
    key = jax.random.PRNGKey(0)
    k1, k2, k3, k4 = jax.random.split(key, 4)

    logits = jax.random.normal(k1, (N, C, H, W), dtype=jnp.float32)
    x = jax.nn.log_softmax(logits, axis=1)                     # NLLLoss2d expects log-probs
    target = jax.random.randint(k2, (N, H, W), 0, C, dtype=jnp.int32)
    # 0/1 mask and weight shipped as bf16 (mask exact; smaller HBM side streams).
    target_bin = (jax.random.uniform(k3, (N, C, H, W)) > 0.5).astype(jnp.bfloat16)
    weight = jax.random.uniform(k4, (N, H, W), dtype=jnp.float32).astype(jnp.bfloat16)

    y = combined_loss(x, target, target_bin, weight, target_bin_is_binary=True)
    jax.block_until_ready(y)

    y_ref = _reference(x, target, target_bin, weight)
    assert abs(float(y) - float(y_ref)) <= 1e-3 * max(1.0, abs(float(y_ref))), (
        float(y), float(y_ref))
    print("KERNEL_OK")
</pallas_src>

<mosaic_0001>
module attributes {stable_mosaic.version = 11 : i64} {
  func.func @_combined_loss_kernel(%arg0: i32, %arg1: i32, %arg2: i32, %arg3: memref<1x4x256xf32, #tpu.memory_space<vmem>>, %arg4: memref<1x4x256xbf16, #tpu.memory_space<vmem>>, %arg5: memref<1x1x256xbf16, #tpu.memory_space<vmem>>, %arg6: memref<1x1x256xbf16, #tpu.memory_space<vmem>>, %arg7: memref<1x1x128xf32, #tpu.memory_space<vmem>>, %arg8: memref<4xf32, #tpu.memory_space<smem>>) attributes {dimension_semantics = [#tpu.dimension_semantics<parallel>, #tpu.dimension_semantics<parallel>, #tpu.dimension_semantics<arbitrary>], iteration_bounds = array<i64: 2, 1, 1>, scalar_prefetch = 0 : i64, scratch_operands = 1 : i64, tpu.core_type = #tpu.core_type<tc>, window_params = [{transform_indices = @transform_0, window_bounds = array<i64: 1, 4, 256>}, {transform_indices = @transform_1, window_bounds = array<i64: 1, 4, 256>}, {transform_indices = @transform_2, window_bounds = array<i64: 1, 1, 256>}, {transform_indices = @transform_3, window_bounds = array<i64: 1, 1, 256>}, {transform_indices = @transform_4, window_bounds = array<i64: 1, 1, 128>}]} {
    %c0_i32 = arith.constant 0 : i32
    %0 = arith.cmpi eq, %arg2, %c0_i32 : i32
    %1 = arith.extui %0 : i1 to i32
    %c0_i32_0 = arith.constant 0 : i32
    %2 = arith.cmpi ne, %1, %c0_i32_0 : i32
    scf.if %2 {
      %cst_23 = arith.constant 0.000000e+00 : f32
      %c0_24 = arith.constant 0 : index
      %55 = memref.load %arg8[%c0_24] : memref<4xf32, #tpu.memory_space<smem>>
      memref.store %cst_23, %arg8[%c0_24] : memref<4xf32, #tpu.memory_space<smem>>
      %cst_25 = arith.constant 0.000000e+00 : f32
      %c1_26 = arith.constant 1 : index
      %56 = memref.load %arg8[%c1_26] : memref<4xf32, #tpu.memory_space<smem>>
      memref.store %cst_25, %arg8[%c1_26] : memref<4xf32, #tpu.memory_space<smem>>
      %cst_27 = arith.constant 0.000000e+00 : f32
      %c2_28 = arith.constant 2 : index
      %57 = memref.load %arg8[%c2_28] : memref<4xf32, #tpu.memory_space<smem>>
      memref.store %cst_27, %arg8[%c2_28] : memref<4xf32, #tpu.memory_space<smem>>
      %cst_29 = arith.constant 0.000000e+00 : f32
      %c3_30 = arith.constant 3 : index
      %58 = memref.load %arg8[%c3_30] : memref<4xf32, #tpu.memory_space<smem>>
      memref.store %cst_29, %arg8[%c3_30] : memref<4xf32, #tpu.memory_space<smem>>
    } else {
    }
    %c0 = arith.constant 0 : index
    %c0_1 = arith.constant 0 : index
    %c0_2 = arith.constant 0 : index
    %3 = vector.load %arg3[%c0, %c0_1, %c0_2] : memref<1x4x256xf32, #tpu.memory_space<vmem>>, vector<1x4x256xf32>
    %4 = vector.shape_cast %3 : vector<1x4x256xf32> to vector<4x256xf32>
    %c0_3 = arith.constant 0 : index
    %c0_4 = arith.constant 0 : index
    %c0_5 = arith.constant 0 : index
    %5 = vector.load %arg4[%c0_3, %c0_4, %c0_5] : memref<1x4x256xbf16, #tpu.memory_space<vmem>>, vector<1x4x256xbf16>
    %6 = vector.shape_cast %5 : vector<1x4x256xbf16> to vector<4x256xbf16>
    %7 = arith.extf %6 : vector<4x256xbf16> to vector<4x256xf32>
    %c0_6 = arith.constant 0 : index
    %c0_7 = arith.constant 0 : index
    %c0_8 = arith.constant 0 : index
    %8 = vector.load %arg5[%c0_6, %c0_7, %c0_8] : memref<1x1x256xbf16, #tpu.memory_space<vmem>>, vector<1x1x256xbf16>
    %9 = vector.shape_cast %8 : vector<1x1x256xbf16> to vector<1x256xbf16>
    %10 = arith.extf %9 : vector<1x256xbf16> to vector<1x256xf32>
    %c0_9 = arith.constant 0 : index
    %c0_10 = arith.constant 0 : index
    %c0_11 = arith.constant 0 : index
    %11 = vector.load %arg6[%c0_9, %c0_10, %c0_11] : memref<1x1x256xbf16, #tpu.memory_space<vmem>>, vector<1x1x256xbf16>
    %12 = vector.shape_cast %11 : vector<1x1x256xbf16> to vector<1x256xbf16>
    %13 = arith.extf %12 : vector<1x256xbf16> to vector<1x256xf32>
    %14 = tpu.iota {dimensions = array<i32: 0>} : vector<4x1xi32>
    %15 = arith.sitofp %14 : vector<4x1xi32> to vector<4x1xf32>
    %16 = vector.broadcast %15 : vector<4x1xf32> to vector<4x256xf32>
    %17 = vector.broadcast %10 : vector<1x256xf32> to vector<4x256xf32>
    %18 = arith.cmpf oeq, %16, %17 : vector<4x256xf32>
    %cst = arith.constant 0.000000e+00 : f32
    %19 = vector.broadcast %cst : f32 to vector<4x256xf32>
    %20 = arith.select %18, %4, %19 : vector<4x256xi1>, vector<4x256xf32>
    %21 = arith.mulf %4, %4 : vector<4x256xf32>
    %22 = arith.addf %21, %7 : vector<4x256xf32>
    %c0_12 = arith.constant 0 : index
    %23 = memref.load %arg8[%c0_12] : memref<4xf32, #tpu.memory_space<smem>>
    %24 = arith.mulf %4, %7 : vector<4x256xf32>
    %25 = vector.shape_cast %24 : vector<4x256xf32> to vector<1x4x256xf32>
    %cst_13 = arith.constant dense<0.000000e+00> : vector<1xf32>
    %26 = vector.multi_reduction <add>, %25, %cst_13 [1, 2] : vector<1x4x256xf32> to vector<1xf32>
    %27 = vector.shape_cast %26 : vector<1xf32> to vector<1x1x1xf32>
    %28 = vector.extract %27[0, 0, 0] : f32 from vector<1x1x1xf32>
    %29 = arith.addf %23, %28 : f32
    %c0_14 = arith.constant 0 : index
    %30 = memref.load %arg8[%c0_14] : memref<4xf32, #tpu.memory_space<smem>>
    memref.store %29, %arg8[%c0_14] : memref<4xf32, #tpu.memory_space<smem>>
    %c1 = arith.constant 1 : index
    %31 = memref.load %arg8[%c1] : memref<4xf32, #tpu.memory_space<smem>>
    %32 = vector.shape_cast %22 : vector<4x256xf32> to vector<1x4x256xf32>
    %cst_15 = arith.constant dense<0.000000e+00> : vector<1xf32>
    %33 = vector.multi_reduction <add>, %32, %cst_15 [1, 2] : vector<1x4x256xf32> to vector<1xf32>
    %34 = vector.shape_cast %33 : vector<1xf32> to vector<1x1x1xf32>
    %35 = vector.extract %34[0, 0, 0] : f32 from vector<1x1x1xf32>
    %36 = arith.addf %31, %35 : f32
    %c1_16 = arith.constant 1 : index
    %37 = memref.load %arg8[%c1_16] : memref<4xf32, #tpu.memory_space<smem>>
    memref.store %36, %arg8[%c1_16] : memref<4xf32, #tpu.memory_space<smem>>
    %c2 = arith.constant 2 : index
    %38 = memref.load %arg8[%c2] : memref<4xf32, #tpu.memory_space<smem>>
    %39 = vector.shape_cast %20 : vector<4x256xf32> to vector<1x4x256xf32>
    %cst_17 = arith.constant dense<0.000000e+00> : vector<1xf32>
    %40 = vector.multi_reduction <add>, %39, %cst_17 [1, 2] : vector<1x4x256xf32> to vector<1xf32>
    %41 = vector.shape_cast %40 : vector<1xf32> to vector<1x1x1xf32>
    %42 = vector.extract %41[0, 0, 0] : f32 from vector<1x1x1xf32>
    %43 = arith.addf %38, %42 : f32
    %c2_18 = arith.constant 2 : index
    %44 = memref.load %arg8[%c2_18] : memref<4xf32, #tpu.memory_space<smem>>
    memref.store %43, %arg8[%c2_18] : memref<4xf32, #tpu.memory_space<smem>>
    %c3 = arith.constant 3 : index
    %45 = memref.load %arg8[%c3] : memref<4xf32, #tpu.memory_space<smem>>
    %46 = vector.shape_cast %13 : vector<1x256xf32> to vector<1x1x256xf32>
    %cst_19 = arith.constant dense<0.000000e+00> : vector<1xf32>
    %47 = vector.multi_reduction <add>, %46, %cst_19 [1, 2] : vector<1x1x256xf32> to vector<1xf32>
    %48 = vector.shape_cast %47 : vector<1xf32> to vector<1x1x1xf32>
    %49 = vector.extract %48[0, 0, 0] : f32 from vector<1x1x1xf32>
    %50 = arith.addf %45, %49 : f32
    %c3_20 = arith.constant 3 : index
    %51 = memref.load %arg8[%c3_20] : memref<4xf32, #tpu.memory_space<smem>>
    memref.store %50, %arg8[%c3_20] : memref<4xf32, #tpu.memory_space<smem>>
    %c0_i32_21 = arith.constant 0 : i32
    %52 = arith.cmpi eq, %arg2, %c0_i32_21 : i32
    %53 = arith.extui %52 : i1 to i32
    %c0_i32_22 = arith.constant 0 : i32
    %54 = arith.cmpi ne, %53, %c0_i32_22 : i32
    scf.if %54 {
      %55 = tpu.iota {dimensions = array<i32: 2>} : vector<1x1x128xi32>
      %c0_i32_23 = arith.constant 0 : i32
      %56 = vector.broadcast %c0_i32_23 : i32 to vector<1x1x128xi32>
      %57 = arith.cmpi eq, %55, %56 : vector<1x1x128xi32>
      %c0_24 = arith.constant 0 : index
      %58 = memref.load %arg8[%c0_24] : memref<4xf32, #tpu.memory_space<smem>>
      %c1_i32 = arith.constant 1 : i32
      %59 = vector.broadcast %c1_i32 : i32 to vector<1x1x128xi32>
      %60 = arith.cmpi eq, %55, %59 : vector<1x1x128xi32>
      %c1_25 = arith.constant 1 : index
      %61 = memref.load %arg8[%c1_25] : memref<4xf32, #tpu.memory_space<smem>>
      %c2_i32 = arith.constant 2 : i32
      %62 = vector.broadcast %c2_i32 : i32 to vector<1x1x128xi32>
      %63 = arith.cmpi eq, %55, %62 : vector<1x1x128xi32>
      %c2_26 = arith.constant 2 : index
      %64 = memref.load %arg8[%c2_26] : memref<4xf32, #tpu.memory_space<smem>>
      %c3_i32 = arith.constant 3 : i32
      %65 = vector.broadcast %c3_i32 : i32 to vector<1x1x128xi32>
      %66 = arith.cmpi eq, %55, %65 : vector<1x1x128xi32>
      %c3_27 = arith.constant 3 : index
      %67 = memref.load %arg8[%c3_27] : memref<4xf32, #tpu.memory_space<smem>>
      %cst_28 = arith.constant 0.000000e+00 : f32
      %68 = vector.broadcast %67 : f32 to vector<1x1x128xf32>
      %69 = vector.broadcast %cst_28 : f32 to vector<1x1x128xf32>
      %70 = arith.select %66, %68, %69 : vector<1x1x128xi1>, vector<1x1x128xf32>
      %71 = vector.broadcast %64 : f32 to vector<1x1x128xf32>
      %72 = arith.select %63, %71, %70 : vector<1x1x128xi1>, vector<1x1x128xf32>
      %73 = vector.broadcast %61 : f32 to vector<1x1x128xf32>
      %74 = arith.select %60, %73, %72 : vector<1x1x128xi1>, vector<1x1x128xf32>
      %75 = vector.broadcast %58 : f32 to vector<1x1x128xf32>
      %76 = arith.select %57, %75, %74 : vector<1x1x128xi1>, vector<1x1x128xf32>
      %c0_29 = arith.constant 0 : index
      %c0_30 = arith.constant 0 : index
      %c0_31 = arith.constant 0 : index
      %77 = vector.load %arg7[%c0_29, %c0_30, %c0_31] : memref<1x1x128xf32, #tpu.memory_space<vmem>>, vector<1x1x128xf32>
      tpu.vector_store %arg7[%c0_29, %c0_30, %c0_31], %76 {strides = array<i32>} : memref<1x1x128xf32, #tpu.memory_space<vmem>>, vector<1x1x128xf32>,
    } else {
    }
    return
  }
  func.func @transform_0(%arg0: i32, %arg1: i32, %arg2: i32) -> (i32, i32, i32) {
    %c1_i32 = arith.constant 1 : i32
    %0 = arith.muli %arg1, %c1_i32 : i32
    %1 = arith.addi %0, %arg2 : i32
    %c0_i32 = arith.constant 0 : i32
    %c0_i32_0 = arith.constant 0 : i32
    return %arg0, %c0_i32, %1 : i32, i32, i32
  }
  func.func @transform_1(%arg0: i32, %arg1: i32, %arg2: i32) -> (i32, i32, i32) {
    %c1_i32 = arith.constant 1 : i32
    %0 = arith.muli %arg1, %c1_i32 : i32
    %1 = arith.addi %0, %arg2 : i32
    %c0_i32 = arith.constant 0 : i32
    %c0_i32_0 = arith.constant 0 : i32
    return %arg0, %c0_i32, %1 : i32, i32, i32
  }
  func.func @transform_2(%arg0: i32, %arg1: i32, %arg2: i32) -> (i32, i32, i32) {
    %c1_i32 = arith.constant 1 : i32
    %0 = arith.muli %arg1, %c1_i32 : i32
    %1 = arith.addi %0, %arg2 : i32
    %c0_i32 = arith.constant 0 : i32
    %c0_i32_0 = arith.constant 0 : i32
    return %arg0, %c0_i32, %1 : i32, i32, i32
  }
  func.func @transform_3(%arg0: i32, %arg1: i32, %arg2: i32) -> (i32, i32, i32) {
    %c1_i32 = arith.constant 1 : i32
    %0 = arith.muli %arg1, %c1_i32 : i32
    %1 = arith.addi %0, %arg2 : i32
    %c0_i32 = arith.constant 0 : i32
    %c0_i32_0 = arith.constant 0 : i32
    return %arg0, %c0_i32, %1 : i32, i32, i32
  }
  func.func @transform_4(%arg0: i32, %arg1: i32, %arg2: i32) -> (i32, i32, i32) {
    %c1_i32 = arith.constant 1 : i32
    %0 = arith.muli %arg0, %c1_i32 : i32
    %1 = arith.addi %0, %arg1 : i32
    %c0_i32 = arith.constant 0 : i32
    %c0_i32_0 = arith.constant 0 : i32
    %c0_i32_1 = arith.constant 0 : i32
    return %1, %c0_i32, %c0_i32_0 : i32, i32, i32
  }
}

</mosaic_0001>

<bundles_post_ra>
// kernel: combined_loss.1
= control target key start
LH: loop header
LB: loop body
LE: loop exit
PB: predicated region body
PF: predicated region fallthrough
CT: control target
= control target key end

     0   :  { %s739_s15 = smov 0   ;;  %s741_s16 = smov 0   ;;  %s795_s0 = inlined_call_operand.vmem [shape: f32[2,4,256], index: 0, kind: input, shape index: {}]   ;;  %s796_s1 = inlined_call_operand.vmem [shape: bf16[2,4,256], index: 1, kind: input, shape index: {}]   ;;  %s797_s2 = inlined_call_operand.vmem [shape: bf16[2,1,256], index: 2, kind: input, shape index: {}]   ;;  %s798_s3 = inlined_call_operand.vmem [shape: bf16[2,1,256], index: 3, kind: input, shape index: {}]   ;;  %s799_s4 = inlined_call_operand.vmem [shape: f32[2,1,128], index: 4, kind: output, shape index: {}]  }
   0x1   :  { %s743_s17 = smov 0  }
   0x2 LB: > { %s33_s18 = sadd.s32 1, %s708_s16  ;;  %p640_p0 = scmp.ge.s32.totalorder %s712_s17, 1  ;;  %s712_s17 = sphi %s743_s17, %s14_s17   ;;  %s708_s16 = sphi %s741_s16, %s801_s16   ;;  %s704_s15 = sphi %s739_s15, %s800_s15  }
   0x3   : > { %p35_p1 = scmp.ge.s32.totalorder %s33_s18, 2  ;;  %p255_p2 = scmp.lt.s32.totalorder %s712_s17, 3 }
   0x5   : > { %s803_s18 = smov (%p35_p1, %s33_s18), 0  ;;  %p256_p3 = pnand %p640_p0, %p255_p2 }
   0x6   : > { %p315_p4 = scmp.lt.s32.totalorder (!%p256_p3), %s704_s15, 1 }
   0x7   : > { %259 = sbr.rel (%p256_p3) target bundleno = 239 (0xef), region = 36 }
   0xc   : > { %v383_v0 = vlaneseq  ;;  %s805_s15 = smov (!%p315_p4, %s704_s15), 1  ;;  %vm419_vm0 = vcmask 1043456   ;;  %vm482_vm1 = vcmask 1040384  }
   0xd   : > { %s655_s19 = sshll.u32 %s805_s15, 3  ;;  %s656_s20 = sshll.u32 %s805_s15, 2 }
   0xe   : > { %v384_v1 = vshrl.u32 %v383_v0, 7  ;;  %s322_s23 = scalar_lea.vmem %s795_s0, %s655_s19  ;;  %s334_s26 = scalar_lea.vmem %s796_s1, %s656_s20 }
   0xf   : > { %v376_v2 = vld [vmem:[%s322_s23] sm:$0xff]  ;;  %s645_s27 = sshll.u32 %s805_s15, 1  ;;  %s362_s14 = scalar_lea.vmem %s799_s4, %s805_s15 }
  0x10   : > { %v377_v3 = vld [vmem:[%s334_s26] sm:$0xf]  ;;  %s345_s30 = scalar_lea.vmem %s797_s2, %s645_s27  ;;  %v389_v5 = vsub.s32 0, %v384_v1  ;;  %v393_v6 = vsub.s32 2, %v384_v1  ;;  %v412_v7 = vmul.f32 %v376_v2, %v376_v2  ;;  %s356_s7 = scalar_lea.vmem %s798_s3, %s645_s27  ;;  %v385_v14 = vcvt.s32.f32 %v384_v1 }
  0x11   : > { %v378_v4 = vunpack.c.l.bf16 %v377_v3  ;;  %v379_v8 = vld [vmem:[%s345_s30] sm:$0x3]  ;;  %v408_v19 = vcombine.high %v376_v2, %v376_v2  ;;  %v502_v3 = vand.u32 127, %v383_v0 }
  0x12   : > { %v381_v9 = vld [vmem:[%s356_s7] sm:$0x3]  ;;  %v380_v11 = vunpack.c.l.bf16 %v379_v8 }
  0x13   : > { %v415_v10 = vmul.f32 %v378_v4, %v376_v2  ;;  %v413_v12 = vadd.f32 %v412_v7, %v378_v4  ;;  %v382_v13 = vunpack.c.l.bf16 %v381_v9  ;;  %vm509_vm4 = vcmp.eq.s32.totalorder %v502_v3, 3 }
  0x14   : > { %v390_v17 = vrot.slane %v380_v11, %v389_v5  ;;  %v394_v18 = vrot.slane %v380_v11, %v393_v6  ;;  %vm507_vm5 = vcmp.eq.s32.totalorder %v502_v3, 2  ;;  %vm505_vm6 = vcmp.eq.s32.totalorder %v502_v3, 1 }
  0x15   : > { %v417_v15 = vcombine.high %v415_v10, %v415_v10  ;;  %v420_v16 = vsel %vm419_vm0, %v415_v10, 0.0  ;;  %v437_v20 = vcombine.high %v413_v12, %v413_v12  ;;  %v439_v21 = vsel %vm419_vm0, %v413_v12, 0.0 }
  0x16   : > { %v475_v22 = vrot.slane %v382_v13, %v389_v5  ;;  %v400_v24 = vrot.slane %v390_v17, %v389_v5  ;;  %v404_v25 = vrot.slane %v394_v18, %v389_v5  ;;  %v479_v26 = vrot.slane %v382_v13, %v393_v6 }
  0x17   : > { %v421_v23 = vsel %vm419_vm0, %v417_v15, 0.0  ;;  %v440_v28 = vsel %vm419_vm0, %v437_v20, 0.0  ;;  %vm503_vm7 = vcmp.eq.s32.totalorder %v502_v3, 0 }
  0x18   : > { %v422_v27 = vadd.f32 %v421_v23, %v420_v16  ;;  %vm405_vm2 = vcmp.eq.f32.partialorder %v385_v14, %v400_v24  ;;  %vm406_vm3 = vcmp.eq.f32.partialorder %v385_v14, %v404_v25  ;;  %v441_v31 = vadd.f32 %v440_v28, %v439_v21 }
  0x19   : > { %v410_v29 = vsel %vm405_vm2, %v376_v2, 0.0  ;;  %v411_v30 = vsel %vm406_vm3, %v408_v19, 0.0  ;;  %v483_v34 = vsel %vm482_vm1, %v475_v22, 0.0  ;;  %v484_v35 = vsel %vm482_vm1, %v479_v26, 0.0 }
  0x1a   : > { %423 = vadd.xlane.f32.xlu0 %v422_v27  ;;  %v455_v32 = vsel %vm419_vm0, %v410_v29, 0.0  ;;  %v456_v33 = vsel %vm419_vm0, %v411_v30, 0.0  ;;  %v485_v37 = vadd.f32 %v484_v35, %v483_v34 }
  0x1b   : > { %v457_v36 = vadd.f32 %v456_v33, %v455_v32 }
  0x1d   : > { %458 = vadd.xlane.f32.xlu1 %v457_v36 }
  0x1e   : > { %442 = vadd.xlane.f32.xlu0 %v441_v31 }
  0x21   : > { %486 = vadd.xlane.f32.xlu1 %v485_v37 }
  0xa3   : > { %v424_v38 = vpop.xlane.xlu0 %423 }
  0xa4   : > { %v425_v39 = vrot.slane %v424_v38, 4 }
  0xa6   : > { %v426_v40 = vadd.f32 %v425_v39, %v424_v38  ;;  %v459_v41 = vpop.xlane.xlu1 %458 }
  0xa7   : > { %v443_v42 = vpop.xlane.xlu0 %442  ;;  %v460_v44 = vrot.slane %v459_v41, 4 }
  0xa8   : > { %v427_v43 = vrot.slane %v426_v40, 2  ;;  %v444_v45 = vrot.slane %v443_v42, 4 }
  0xa9   : > { %v461_v46 = vadd.f32 %v460_v44, %v459_v41 }
  0xaa   : > { %v445_v47 = vadd.f32 %v444_v45, %v443_v42  ;;  %v428_v48 = vadd.f32 %v427_v43, %v426_v40  ;;  %v487_v49 = vpop.xlane.xlu1 %486 }
  0xab   : > { %v462_v50 = vrot.slane %v461_v46, 2  ;;  %v488_v52 = vrot.slane %v487_v49, 4 }
  0xac   : > { %v446_v51 = vrot.slane %v445_v47, 2  ;;  %v429_v53 = vrot.slane %v428_v48, 1 }
  0xad   : > { %v489_v55 = vadd.f32 %v488_v52, %v487_v49  ;;  %v463_v57 = vadd.f32 %v462_v50, %v461_v46 }
  0xae   : > { %v447_v54 = vadd.f32 %v446_v51, %v445_v47  ;;  %v430_v56 = vadd.f32 %v429_v53, %v428_v48 }
  0xaf   : > { %v490_v58 = vrot.slane %v489_v55, 2  ;;  %v464_v60 = vrot.slane %v463_v57, 1 }
  0xb0   : > { %657 = vpush %v430_v56  ;;  %v448_v59 = vrot.slane %v447_v54, 1 }
  0xb1   : > { %v491_v61 = vadd.f32 %v490_v58, %v489_v55  ;;  %v465_v63 = vadd.f32 %v464_v60, %v463_v57 }
  0xb2   : > { %v449_v62 = vadd.f32 %v448_v59, %v447_v54 }
  0xb3   : > { %v492_v1 = vrot.slane %v491_v61, 1 }
  0xb4   : > { %659 = vpush %v449_v62 }
  0xb5   : > { %661 = vpush %v465_v63  ;;  %v493_v2 = vadd.f32 %v492_v1, %v491_v61 }
  0xb7   : > { %663 = vpush %v493_v2 }
  0xe1   : > { %s658_s8 = spop %657 }
  0xe2   : > { %v517_v9 = vstv %s658_s8 }
  0xe5   : > { %s660_s9 = spop %659 }
  0xe6   : > { %s662_s10 = spop %661  ;;  %v515_v7 = vstv %s660_s9 }
  0xe7   : > { %v513_v5 = vstv %s662_s10 }
  0xe8   : > { %s664_s11 = spop %663 }
  0xe9   : > { %v511_v4 = vstv %s664_s11 }
  0xea   : > { %v512_v6 = vsel %vm509_vm4, %v511_v4, 0.0 }
  0xeb   : > { %v514_v8 = vsel %vm507_vm5, %v513_v5, %v512_v6 }
  0xec   : > { %v516_v10 = vsel %vm505_vm6, %v515_v7, %v514_v8 }
  0xed   : > { %v518_v0 = vsel %vm503_vm7, %v517_v9, %v516_v10 }
  0xee   : > { %519 = vst [vmem:[%s362_s14] sm:$0x1] %v518_v0 }
  0xef PF: > { %s14_s17 = sadd.s32 1, %s712_s17   ;;  %s800_s15 = smov %s708_s16 }
  0xf0   : > { %p11_p5 = scmp.ge.s32.totalorder %s14_s17, 4   ;;  %s801_s16 = smov %s803_s18 }
  0xf2   :  { %13 = sbr.rel (!%p11_p5) target bundleno = 2 (0x2), region = 91 }

</bundles_post_ra>
